<compile_context>
chip_gen: v6e
topology: v6e:2x2x1
jax: 0.10.0
libtpu: 0.0.40
codegen_flags: <defaults>
</compile_context>

<pallas_src>
from functools import lru_cache

import jax
import jax.numpy as jnp
from jax.experimental import pallas as pl
from jax.experimental.pallas import tpu as pltpu

_LANES = 128                      # vreg lane width (last dim)
_SUBLANES = 8                     # vreg sublane width for 32-bit dtypes
_MIN_GRID_STEPS = 8               # target steps for pipelining / 2-TC sharding
_MIN_TILE_BYTES = 256 * 1024      # don't split blocks below this


# ---------------------------------------------------------------------------
# kernels
# ---------------------------------------------------------------------------
def _norm_relu_kernel(x_ref, scale_ref, bias_ref, o_ref):
    """o = max(x * scale + bias, 0); scale/bias broadcast over rows or cols."""
    x = x_ref[...].astype(jnp.float32)
    y = x * scale_ref[...] + bias_ref[...]
    o_ref[...] = jnp.maximum(y, 0.0).astype(o_ref.dtype)


def _relu_kernel(x_ref, o_ref):
    """skip_norm specialization: plain ReLU, no scale/bias input streams."""
    o_ref[...] = jnp.maximum(x_ref[...], 0.0).astype(o_ref.dtype)


# ---------------------------------------------------------------------------
# hardware / tiling helpers
# ---------------------------------------------------------------------------
@lru_cache(maxsize=None)
def _tiling_params():
    """(tile_budget_bytes, vmem_limit_bytes) for the current TPU generation."""
    try:
        cap = int(pltpu.get_tpu_info().vmem_capacity_bytes)
    except Exception:                     # pragma: no cover - conservative default
        cap = 128 * 1024 * 1024
    if cap <= 64 * 1024 * 1024:           # v7x-class: 64 MiB per TensorCore
        vmem_limit = min(52 * 1024 * 1024, (cap * 13) // 16)
        tile_budget = min(8 * 1024 * 1024, vmem_limit // 6)
    else:                                 # v5e / v6e: 128 MiB
        vmem_limit = 80 * 1024 * 1024
        tile_budget = 14 * 1024 * 1024
    return tile_budget, vmem_limit


def _packed_sublanes(itemsize):
    """Rows per packed vreg: 8 for f32, 16 for bf16, 32 for int8/fp8."""
    return max(_SUBLANES, (_SUBLANES * 4) // max(1, itemsize))


def _pick_blocks(rows, cols, itemsize, budget, min_steps, *,
                 row_extra=0, col_extra=0):
    """Pick a (row_block, col_block) tile for a (rows, cols) slab.

    Each extent is either a multiple of the packed sublane / lane count or the
    full array extent (the TPU (8,128) BlockSpec rule).  `row_extra` /
    `col_extra` are extra VMEM bytes per tile row / column (lane- or sublane-
    padded scale/bias blocks) counted against the budget.  After sizing for
    the budget, blocks are split until the grid has >= `min_steps` steps (or
    blocks would drop below ~_MIN_TILE_BYTES).
    """
    sub = _packed_sublanes(itemsize)

    # --- column (lane) block: full width if a `sub`-row strip fits the budget,
    #     otherwise the largest multiple of 128 that does. ---
    per_col = sub * itemsize + col_extra
    if cols <= _LANES or cols * per_col <= budget:
        col_block = cols
    else:
        col_block = (budget // per_col // _LANES) * _LANES
        col_block = max(_LANES, min(col_block, (cols // _LANES) * _LANES))

    # --- row (sublane) block: as many rows as the budget allows, capped. ---
    per_row = col_block * itemsize + row_extra
    row_cap = (budget - col_block * col_extra) // max(1, per_row)
    row_cap = min(1024, max(sub, row_cap))
    if rows <= row_cap:
        row_block = rows                          # full extent: always legal
    else:
        row_block = max(sub, (row_cap // sub) * sub)

    # --- guarantee enough grid steps for DMA/compute overlap and, on multi-
    #     TensorCore parts (v7x), something to shard across parallel axes. ---
    def nsteps(rb, cb):
        return pl.cdiv(rows, rb) * pl.cdiv(cols, cb)

    while (nsteps(row_block, col_block) < min_steps
           and row_block * col_block * itemsize > 2 * _MIN_TILE_BYTES):
        if row_block > sub and rows > sub:
            new_rb = max(sub, -(-(row_block // 2) // sub) * sub)   # ceil to sub
            if new_rb < row_block:
                row_block = new_rb
                continue
        if col_block > _LANES and cols > _LANES:
            new_cb = max(_LANES, -(-(col_block // 2) // _LANES) * _LANES)
            if new_cb < col_block:
                col_block = new_cb
                continue
        break                                      # cannot split further
    return row_block, col_block


def _split_spatial(rows, hw, sub):
    """Smallest f dividing hw with (hw//f) % 128 == 0 and rows*f >= sub.

    Used when N*C < packed-sublane count: splitting the (lane-aligned) spatial
    dim raises the row count so VMEM tiles are not sublane-starved.
    """
    if rows >= sub or hw % _LANES != 0:
        return 1
    for cand in range(1, hw // _LANES + 1):
        if hw % cand == 0 and (hw // cand) % _LANES == 0 and rows * cand >= sub:
            return cand
    return 1


# ---------------------------------------------------------------------------
# launcher
# ---------------------------------------------------------------------------
def _launch(kernel, x2, extras=(), extras_axis=None, donate_input=False):
    """Run an elementwise kernel over a 2-D slab with pipelined big tiles.

    extras_axis: None  -> no scale/bias inputs
                 "row" -> extras shaped (rows, 1), vary with the row block
                 "col" -> extras shaped (1, cols), vary with the column block
    """
    rows, cols = x2.shape
    itemsize = x2.dtype.itemsize
    tile_budget, vmem_limit = _tiling_params()

    # lane/sublane-padded VMEM cost of the scale/bias blocks (2 f32 arrays).
    row_extra = 2 * _LANES * 4 if extras_axis == "row" else 0
    col_extra = 2 * _SUBLANES * 4 if extras_axis == "col" else 0

    row_block, col_block = _pick_blocks(
        rows, cols, itemsize, tile_budget, _MIN_GRID_STEPS,
        row_extra=row_extra, col_extra=col_extra)

    if extras_axis == "col":
        # scale/bias vary with the column block: put the column axis on the
        # OUTER grid dim so those blocks are fetched once per column block,
        # not re-DMA'd on every (fast-axis) step.
        grid = (pl.cdiv(cols, col_block), pl.cdiv(rows, row_block))
        data_spec = pl.BlockSpec((row_block, col_block), lambda j, i: (i, j))
        extra_specs = [pl.BlockSpec((1, col_block), lambda j, i: (0, j))
                       for _ in extras]
    else:
        grid = (pl.cdiv(rows, row_block), pl.cdiv(cols, col_block))
        data_spec = pl.BlockSpec((row_block, col_block), lambda i, j: (i, j))
        if extras_axis == "row":
            extra_specs = [pl.BlockSpec((row_block, 1), lambda i, j: (i, 0))
                           for _ in extras]
        else:
            extra_specs = []

    return pl.pallas_call(
        kernel,
        out_shape=jax.ShapeDtypeStruct((rows, cols), x2.dtype),
        grid=grid,
        in_specs=[data_spec] + extra_specs,
        out_specs=data_spec,
        input_output_aliases=({0: 0} if donate_input else {}),
        compiler_params=pltpu.CompilerParams(
            dimension_semantics=("parallel", "parallel"),
            vmem_limit_bytes=vmem_limit,
        ),
    )(x2, *extras)


# ---------------------------------------------------------------------------
# module forward
# ---------------------------------------------------------------------------
def _xla_forward(x, scale_c, bias_c, skip_norm):
    """Plain-XLA fused elementwise path for tiny / awkward shapes."""
    if skip_norm:
        return jnp.maximum(x, 0.0).astype(x.dtype)
    C = x.shape[1]
    y = (x.astype(jnp.float32) * scale_c.reshape(1, C, 1, 1)
         + bias_c.reshape(1, C, 1, 1))
    return jnp.maximum(y, 0.0).astype(x.dtype)


def sequential_forward(x, mean_c, sigma_c, *, skip_norm=False,
                       min_pallas_bytes=2 * 1024 * 1024, donate_input=False):
    """Forward of Sequential(Normalization(mean_c, sigma_c), ReLU(dims)).

    x        : (N, C, H, W) array (NCHW, PyTorch convention)
    mean_c   : (C,) per-channel mean
    sigma_c  : (C,) per-channel sigma (zeros give inf/NaN, matching the
               reference (x - mean) / sigma semantics)
    skip_norm: trace-time flag -- skip the Normalization layer (ReLU only)
    min_pallas_bytes: inputs smaller than this use plain XLA fusion, where a
        1-2 step Pallas grid would only add custom-call / per-step overhead.
    donate_input: alias x's buffer to the output (caller must donate x).
    """
    N, C, H, W = x.shape
    itemsize = x.dtype.itemsize
    nbytes = x.size * itemsize
    sub = _packed_sublanes(itemsize)

    # Fused f32 scale/bias:  (x - mean)/sigma == x*scale + bias.
    scale_c = (1.0 / sigma_c).astype(jnp.float32)
    bias_c = (-mean_c / sigma_c).astype(jnp.float32)

    if nbytes < min_pallas_bytes:
        return _xla_forward(x, scale_c, bias_c, skip_norm)

    L = H * W
    lane_aligned = (L % _LANES == 0)

    if lane_aligned:
        # (N*C*f, L//f) slab: per-(n,c) scale/bias rows.  f > 1 splits the
        # spatial dim when N*C alone would leave packed vreg sublanes empty.
        f = _split_spatial(N * C, L, sub)
        rows, cols = N * C * f, L // f
        x2 = x.reshape(rows, cols)
        if skip_norm:
            out2 = _launch(_relu_kernel, x2, donate_input=donate_input)
        else:
            scale2 = jnp.repeat(jnp.tile(scale_c, N), f).reshape(rows, 1)
            bias2 = jnp.repeat(jnp.tile(bias_c, N), f).reshape(rows, 1)
            out2 = _launch(_norm_relu_kernel, x2, (scale2, bias2),
                           extras_axis="row", donate_input=donate_input)
    else:
        rows, cols = N, C * L            # last dim stays large even for 7x7 maps
        if rows < sub:
            # Sublane-starved (tiny batch, odd spatial dims): XLA fusion is
            # already at the roofline and avoids 1-2-valid-sublane tiles.
            # TODO(synk): group g channels so g*H*W % 128 == 0 and reshape to
            # (N*C/g, g*H*W) when such a grouping exists.
            return _xla_forward(x, scale_c, bias_c, skip_norm)
        x2 = x.reshape(rows, cols)
        if skip_norm:
            out2 = _launch(_relu_kernel, x2, donate_input=donate_input)
        else:
            scale2 = jnp.repeat(scale_c, L).reshape(1, cols)   # per flat column
            bias2 = jnp.repeat(bias_c, L).reshape(1, cols)
            out2 = _launch(_norm_relu_kernel, x2, (scale2, bias2),
                           extras_axis="col", donate_input=donate_input)

    return out2.reshape(N, C, H, W)


# ---------------------------------------------------------------------------
# demo / correctness check
# ---------------------------------------------------------------------------
if __name__ == "__main__":
    k0, k1, k2, k3 = jax.random.split(jax.random.PRNGKey(0), 4)

    def ref_fwd(x, mean, sigma):
        C = x.shape[1]
        return jnp.maximum(
            (x.astype(jnp.float32) - mean.reshape(1, C, 1, 1))
            / sigma.reshape(1, C, 1, 1), 0.0)

    # --- primary shapes (NCHW).  ReLU's deepz_lambda does not affect forward. ---
    N, C, H, W = 2, 4, 16, 16
    x = jax.random.normal(k0, (N, C, H, W), dtype=jnp.float32)
    mean_c = jnp.array([0.485, 0.456, 0.406, 0.5], dtype=jnp.float32)
    sigma_c = jnp.array([0.229, 0.224, 0.225, 0.25], dtype=jnp.float32)

    # min_pallas_bytes=0 forces the Pallas path even at these tiny demo sizes.
    out = jax.block_until_ready(
        sequential_forward(x, mean_c, sigma_c, min_pallas_bytes=0))
    assert out.shape == (N, C, H, W)
    assert jnp.allclose(out, ref_fwd(x, mean_c, sigma_c), atol=1e-5, rtol=1e-5)

    # --- skip_norm path: trace-time specialized ReLU-only kernel. ---
    out_skip = jax.block_until_ready(
        sequential_forward(x, mean_c, sigma_c, skip_norm=True,
                           min_pallas_bytes=0))
    assert jnp.allclose(out_skip, jnp.maximum(x, 0.0), atol=1e-6, rtol=1e-6)

    # --- non-lane-aligned (7x7) with batch >= 8: Pallas (N, C*H*W) path,
    #     column axis on the outer grid dimension. ---
    Nb, Cb = 8, 3
    x_b = jax.random.normal(k1, (Nb, Cb, 7, 7), dtype=jnp.float32)
    mean_b = jnp.array([0.485, 0.456, 0.406], dtype=jnp.float32)
    sigma_b = jnp.array([0.229, 0.224, 0.225], dtype=jnp.float32)
    out_b = jax.block_until_ready(
        sequential_forward(x_b, mean_b, sigma_b, min_pallas_bytes=0))
    assert jnp.allclose(out_b, ref_fwd(x_b, mean_b, sigma_b),
                        atol=1e-5, rtol=1e-5)

    # --- non-lane-aligned tiny batch: sublane-starved -> XLA fallback. ---
    x_c = jax.random.normal(k2, (2, 3, 7, 7), dtype=jnp.float32)
    out_c = jax.block_until_ready(
        sequential_forward(x_c, mean_b, sigma_b, min_pallas_bytes=0))
    assert jnp.allclose(out_c, ref_fwd(x_c, mean_b, sigma_b),
                        atol=1e-5, rtol=1e-5)

    # --- lane-aligned small batch: spatial split raises the row count. ---
    x_d = jax.random.normal(k3, (1, 4, 32, 32), dtype=jnp.float32)
    out_d = jax.block_until_ready(
        sequential_forward(x_d, mean_c, sigma_c, min_pallas_bytes=0))
    assert jnp.allclose(out_d, ref_fwd(x_d, mean_c, sigma_c),
                        atol=1e-5, rtol=1e-5)

    # --- bf16 input: dtype-aware (16,128) packed-sublane blocking. ---
    x_bf = x.astype(jnp.bfloat16)
    out_bf = jax.block_until_ready(
        sequential_forward(x_bf, mean_c, sigma_c, min_pallas_bytes=0))
    ref_bf = jnp.maximum(
        x_bf.astype(jnp.float32) * (1.0 / sigma_c).reshape(1, C, 1, 1)
        + (-mean_c / sigma_c).reshape(1, C, 1, 1), 0.0).astype(jnp.bfloat16)
    assert out_bf.dtype == jnp.bfloat16
    assert jnp.allclose(out_bf.astype(jnp.float32), ref_bf.astype(jnp.float32),
                        atol=1e-2, rtol=1e-2)

    # --- moderate size (4 MiB): multi-step pipelined grid. ---
    Nm, Cm, Hm, Wm = 16, 16, 32, 32
    x_m = jax.random.normal(jax.random.PRNGKey(7), (Nm, Cm, Hm, Wm),
                            dtype=jnp.float32)
    mean_m = jnp.linspace(-0.5, 0.5, Cm, dtype=jnp.float32)
    sigma_m = jnp.linspace(0.2, 1.2, Cm, dtype=jnp.float32)
    out_m = jax.block_until_ready(
        sequential_forward(x_m, mean_m, sigma_m, min_pallas_bytes=0))
    assert jnp.allclose(out_m, ref_fwd(x_m, mean_m, sigma_m),
                        atol=1e-4, rtol=1e-4)

    print("KERNEL_OK")
</pallas_src>

<mosaic_0001>
module attributes {stable_mosaic.version = 11 : i64} {
  func.func @_norm_relu_kernel(%arg0: i32, %arg1: i32, %arg2: memref<8x256xf32, #tpu.memory_space<vmem>>, %arg3: memref<8x1xf32, #tpu.memory_space<vmem>>, %arg4: memref<8x1xf32, #tpu.memory_space<vmem>>, %arg5: memref<8x256xf32, #tpu.memory_space<vmem>>) attributes {dimension_semantics = [#tpu.dimension_semantics<parallel>, #tpu.dimension_semantics<parallel>], iteration_bounds = array<i64: 1, 1>, scalar_prefetch = 0 : i64, scratch_operands = 0 : i64, tpu.core_type = #tpu.core_type<tc>, window_params = [{transform_indices = @transform_0, window_bounds = array<i64: 8, 256>}, {transform_indices = @transform_1, window_bounds = array<i64: 8, 1>}, {transform_indices = @transform_2, window_bounds = array<i64: 8, 1>}, {transform_indices = @transform_3, window_bounds = array<i64: 8, 256>}]} {
    %c0 = arith.constant 0 : index
    %c0_0 = arith.constant 0 : index
    %0 = vector.load %arg2[%c0, %c0_0] : memref<8x256xf32, #tpu.memory_space<vmem>>, vector<8x256xf32>
    %c0_1 = arith.constant 0 : index
    %c0_2 = arith.constant 0 : index
    %1 = vector.load %arg3[%c0_1, %c0_2] : memref<8x1xf32, #tpu.memory_space<vmem>>, vector<8x1xf32>
    %2 = vector.broadcast %1 : vector<8x1xf32> to vector<8x256xf32>
    %3 = arith.mulf %0, %2 : vector<8x256xf32>
    %c0_3 = arith.constant 0 : index
    %c0_4 = arith.constant 0 : index
    %4 = vector.load %arg4[%c0_3, %c0_4] : memref<8x1xf32, #tpu.memory_space<vmem>>, vector<8x1xf32>
    %5 = vector.broadcast %4 : vector<8x1xf32> to vector<8x256xf32>
    %6 = arith.addf %3, %5 : vector<8x256xf32>
    %cst = arith.constant 0.000000e+00 : f32
    %7 = vector.broadcast %cst : f32 to vector<8x256xf32>
    %8 = arith.maximumf %6, %7 : vector<8x256xf32>
    %c0_5 = arith.constant 0 : index
    %c0_6 = arith.constant 0 : index
    %9 = vector.load %arg5[%c0_5, %c0_6] : memref<8x256xf32, #tpu.memory_space<vmem>>, vector<8x256xf32>
    tpu.vector_store %arg5[%c0_5, %c0_6], %8 {strides = array<i32>} : memref<8x256xf32, #tpu.memory_space<vmem>>, vector<8x256xf32>,
    return
  }
  func.func @transform_0(%arg0: i32, %arg1: i32) -> (i32, i32) {
    %c0_i32 = arith.constant 0 : i32
    return %arg0, %arg1 : i32, i32
  }
  func.func @transform_1(%arg0: i32, %arg1: i32) -> (i32, i32) {
    %c0_i32 = arith.constant 0 : i32
    %c0_i32_0 = arith.constant 0 : i32
    return %arg0, %c0_i32 : i32, i32
  }
  func.func @transform_2(%arg0: i32, %arg1: i32) -> (i32, i32) {
    %c0_i32 = arith.constant 0 : i32
    %c0_i32_0 = arith.constant 0 : i32
    return %arg0, %c0_i32 : i32, i32
  }
  func.func @transform_3(%arg0: i32, %arg1: i32) -> (i32, i32) {
    %c0_i32 = arith.constant 0 : i32
    return %arg0, %arg1 : i32, i32
  }
}

</mosaic_0001>

<bundles_post_ra>
// kernel: tpu_custom_call.1
= control target key start
LH: loop header
LB: loop body
LE: loop exit
PB: predicated region body
PF: predicated region fallthrough
CT: control target
= control target key end

     0   :  { %v76_v1 = vmov 0   ;;  %s113_s0 = inlined_call_operand.vmem [shape: f32[8,256], index: 0, kind: input, shape index: {}]   ;;  %s114_s1 = inlined_call_operand.vmem [shape: f32[8,1], index: 1, kind: input, shape index: {}]   ;;  %s115_s2 = inlined_call_operand.vmem [shape: f32[8,1], index: 2, kind: input, shape index: {}]   ;;  %s116_s3 = inlined_call_operand.hbm [shape: f32[8,256], index: 3, kind: output, shape index: {}]  }
   0x1   :  { %v17_v0 = vld [vmem:[%s114_s1] sm:$0xff]  ;;  %53 = vset.pattern.permute.xlu0 %v76_v1 }
   0x2   :  { %8 = vsyncpa [#allocation3], 0  ;;  %20 = vperm.xlu0 %53, %v17_v0   ;;  %v25_v2 = vld [vmem:[%s115_s2] sm:$0xff]  ;;  %v16_v5 = vld [vmem:[%s113_s0 + $0x8] sm:$0xff]  ;;  %s77_s1 = smov [#allocation2]  }
   0x3   :  { %v15_v4 = vld [vmem:[%s113_s0] sm:$0xff]  ;;  %s43_s20 = sshll.u32 %s77_s1, 4  ;;  %s44_s20 = int_to_ptr.vmem [resolvable:$true] %s43_s20 }
   0x4   :  { %s54_s2 = scalar_lea.vmem %s44_s20, 256  ;;  %p59_p1 = scmp.lt.s32.totalorder %s44_s20, %s44_s20 }
   0x5   :  { %p55_p0 = scmp.ne.s32.totalorder %s44_s20, %s54_s2  ;;  %p60_p2 = scmp.lt.s32.totalorder %s54_s2, %s54_s2 }
   0x6   :  { %28 = vperm.xlu0 %53, %v25_v2  }
   0x7   :  { %p61_p3 = por %p60_p2, %p59_p1 }
   0x9   :  { %p62_p4 = pnand %p61_p3, %p55_p0 }
  0x7d   :  { %v21_v3 = vpop.permute.xlu0 %20 }
  0x7e   :  { %v23_v6 = vmul.f32 %v21_v3, %v15_v4  ;;  %v24_v7 = vmul.f32 %v21_v3, %v16_v5 }
  0x81   :  { %v29_v8 = vpop.permute.xlu0 %28 }
  0x82   :  { %v31_v9 = vadd.f32 %v29_v8, %v23_v6  ;;  %v32_v10 = vadd.f32 %v29_v8, %v24_v7 }
  0x84   :  { %v33_v11 = vmax.f32 %v31_v9, 0.0  ;;  %v34_v12 = vmax.f32 %v32_v10, 0.0 }
  0x86   :  { %35 = vst [vmem:[#allocation2] sm:$0xff] %v33_v11  ;;  %36 = vst [vmem:[#allocation2 + $0x8] sm:$0xff] %v34_v12 }
  0x87   :  { %65 = shalt.err (!%p62_p4)
}
  0x88   :  { %46 = dma.vmem_to_hbm [thread:$0]  %s44_s20, 256, %s116_s3, [#allocation3]  }
  0x89   :  { %74 = dma.done.wait [#allocation3], 256  }
  0x8a   :  { %75 = vsyncadd [#allocation3], 4294967040 }
  0x8b   :  { %50 = vsyncpa [#allocation3], 1 }

</bundles_post_ra>
